<compile_context>
chip_gen: v7x
topology: tpu7x:2x2x1
jax: 0.10.0
libtpu: 0.0.40
codegen_flags: <defaults>
</compile_context>

<pallas_src>
import jax
import jax.numpy as jnp
from jax.experimental import pallas as pl
from jax.experimental.pallas import tpu as pltpu

_EPS = 1e-5
_VMEM_LIMIT = 32 * 1024 * 1024  # fits the v7x 64 MiB / v5e-v6e 128 MiB parts alike


def _conv_stats_kernel(x_ref, w_ref, sum_ref, sumsq_ref):
    """Per (batch, length-tile) block: h = relu(W @ x); accumulate per-channel moments."""
    @pl.when((pl.program_id(0) == 0) & (pl.program_id(1) == 0))
    def _init():
        sum_ref[...] = jnp.zeros_like(sum_ref)
        sumsq_ref[...] = jnp.zeros_like(sumsq_ref)

    h = jnp.dot(w_ref[...], x_ref[...], preferred_element_type=jnp.float32)  # (Cout, Lt)
    h = jnp.maximum(h, 0.0)
    sum_ref[...] += jnp.sum(h, axis=1, keepdims=True)          # (Cout, 1)
    sumsq_ref[...] += jnp.sum(h * h, axis=1, keepdims=True)    # (Cout, 1)


def _conv_bn_pool_kernel(x_ref, w_ref, scale_ref, shift_ref, pool_ref, o_ref):
    """Per batch block: conv1x1 -> ReLU -> folded BN -> average pool (small shared matmul)."""
    h = jnp.dot(w_ref[...], x_ref[...], preferred_element_type=jnp.float32)  # (Cout, L)
    h = jnp.maximum(h, 0.0)
    hn = h * scale_ref[...] + shift_ref[...]                    # folded BatchNorm (2 VALU ops/elem)
    o_ref[...] = jnp.dot(hn, pool_ref[...], preferred_element_type=jnp.float32)  # (Cout, L_out)


def _pick_lane_tile(L, target=2048):
    """Largest length tile <= target that is a multiple of 128 and divides L; else full L."""
    if L % 128 != 0:
        return L
    t = min(L, target)
    t -= t % 128
    while L % t != 0:
        t -= 128
    return t


def transition_layer(x, w, gamma, beta, *, ks, st, p):
    """x: (N, C_in, L) f32 (PyTorch NCL). w: (C_out, C_in). Returns (N, C_out, L_out) f32."""
    N, Cin, L = x.shape
    Cout = w.shape[0]
    L_out = (L + 2 * p - ks) // st + 1
    x = x.astype(jnp.float32)
    w = w.astype(jnp.float32)

    # ---------------- phase 1: one-pass batch statistics ----------------
    lt = _pick_lane_tile(L)
    n_lt = L // lt
    stats_cost = pl.CostEstimate(
        flops=2 * N * Cout * Cin * L + 4 * N * Cout * L,
        transcendentals=0,
        bytes_accessed=4 * (N * Cin * L + Cout * Cin + 2 * Cout),
    )
    s, ss = pl.pallas_call(
        _conv_stats_kernel,
        grid=(N, n_lt),
        in_specs=[
            pl.BlockSpec((None, Cin, lt), lambda n, l: (n, 0, l)),   # x tile (Cin, lt)
            pl.BlockSpec((Cout, Cin), lambda n, l: (0, 0)),          # weights, resident
        ],
        out_specs=[
            pl.BlockSpec((Cout, 1), lambda n, l: (0, 0)),            # sum accumulator
            pl.BlockSpec((Cout, 1), lambda n, l: (0, 0)),            # sumsq accumulator
        ],
        out_shape=[
            jax.ShapeDtypeStruct((Cout, 1), jnp.float32),
            jax.ShapeDtypeStruct((Cout, 1), jnp.float32),
        ],
        compiler_params=pltpu.CompilerParams(
            dimension_semantics=("arbitrary", "arbitrary"),  # global reduction -> sequential
            vmem_limit_bytes=_VMEM_LIMIT,
        ),
        cost_estimate=stats_cost,
    )(x, w)

    # Fold BN (training mode, biased variance, eps=1e-5) into per-channel scale/shift.
    cnt = float(N * L)
    mean = s / cnt                                              # (Cout, 1)
    var = jnp.maximum(ss / cnt - mean * mean, 0.0)              # one-pass biased variance
    inv = jax.lax.rsqrt(var + _EPS)
    scale = gamma.reshape(Cout, 1).astype(jnp.float32) * inv
    shift = beta.reshape(Cout, 1).astype(jnp.float32) - mean * scale

    # Shared (L, L_out) pooling matrix: P[l, j] = 1/ks iff position l is inside window j
    # (windows defined on the zero-padded sequence). Padded positions contribute 0 and we
    # still divide by ks -> AvgPool1d default count_include_pad=True.
    l_idx = jnp.arange(L)[:, None]
    j_idx = jnp.arange(L_out)[None, :]
    start = j_idx * st - p
    pool = ((l_idx >= start) & (l_idx < start + ks)).astype(jnp.float32) / float(ks)

    # ---------------- phase 2: conv + ReLU + folded BN + pool ----------------
    fwd_cost = pl.CostEstimate(
        flops=2 * N * Cout * Cin * L + 2 * N * Cout * L + 2 * N * Cout * L * L_out,
        transcendentals=0,
        bytes_accessed=4 * (N * Cin * L + Cout * Cin + 2 * Cout + L * L_out + N * Cout * L_out),
    )
    out = pl.pallas_call(
        _conv_bn_pool_kernel,
        grid=(N,),
        in_specs=[
            pl.BlockSpec((None, Cin, L), lambda n: (n, 0, 0)),       # x per batch (Cin, L)
            pl.BlockSpec((Cout, Cin), lambda n: (0, 0)),             # weights, resident
            pl.BlockSpec((Cout, 1), lambda n: (0, 0)),               # BN scale, resident
            pl.BlockSpec((Cout, 1), lambda n: (0, 0)),               # BN shift, resident
            pl.BlockSpec((L, L_out), lambda n: (0, 0)),              # pooling matrix, resident
        ],
        out_specs=pl.BlockSpec((None, Cout, L_out), lambda n: (n, 0, 0)),
        out_shape=jax.ShapeDtypeStruct((N, Cout, L_out), jnp.float32),
        compiler_params=pltpu.CompilerParams(
            dimension_semantics=("parallel",),   # independent batches -> v7x 2-TC sharding
            vmem_limit_bytes=_VMEM_LIMIT,
        ),
        cost_estimate=fwd_cost,
    )(x, w, scale, shift, pool)
    return out


def _reference(x, w, gamma, beta, *, ks, st, p):
    """Pure-JAX reference of the PyTorch forward (training-mode BN, count_include_pad)."""
    h = jnp.einsum('oi,nil->nol', w, x, precision=jax.lax.Precision.HIGHEST)
    h = jnp.maximum(h, 0.0)
    mean = h.mean(axis=(0, 2), keepdims=True)
    var = ((h - mean) ** 2).mean(axis=(0, 2), keepdims=True)
    hn = (h - mean) / jnp.sqrt(var + _EPS) * gamma[None, :, None] + beta[None, :, None]
    hp = jnp.pad(hn, ((0, 0), (0, 0), (p, p)))
    L_out = (x.shape[2] + 2 * p - ks) // st + 1
    cols = [hp[:, :, j * st:j * st + ks].mean(axis=2) for j in range(L_out)]
    return jnp.stack(cols, axis=2)


if __name__ == "__main__":
    N, Cin, Cout, L = 2, 4, 8, 16
    ks, st, p = 4, 2, 1

    key = jax.random.PRNGKey(0)
    kx, kw, kg, kb = jax.random.split(key, 4)
    x = jax.random.normal(kx, (N, Cin, L), dtype=jnp.float32)
    w = jax.random.normal(kw, (Cout, Cin), dtype=jnp.float32) * 0.5  # Conv1d weight (Cout,Cin,1) squeezed
    gamma = 1.0 + 0.1 * jax.random.normal(kg, (Cout,), dtype=jnp.float32)
    beta = 0.1 * jax.random.normal(kb, (Cout,), dtype=jnp.float32)

    y = transition_layer(x, w, gamma, beta, ks=ks, st=st, p=p)
    y = jax.block_until_ready(y)

    y_ref = _reference(x, w, gamma, beta, ks=ks, st=st, p=p)
    assert y.shape == y_ref.shape, (y.shape, y_ref.shape)
    assert jnp.allclose(y, y_ref, atol=1e-4, rtol=1e-4), float(jnp.max(jnp.abs(y - y_ref)))

    print("KERNEL_OK")
</pallas_src>

<mosaic_0001>
module attributes {stable_mosaic.version = 11 : i64} {
  func.func @_conv_stats_kernel(%arg0: i32, %arg1: i32, %arg2: memref<1x4x16xf32, #tpu.memory_space<vmem>>, %arg3: memref<8x4xf32, #tpu.memory_space<vmem>>, %arg4: memref<8x1xf32, #tpu.memory_space<vmem>>, %arg5: memref<8x1xf32, #tpu.memory_space<vmem>>) attributes {dimension_semantics = [#tpu.dimension_semantics<arbitrary>, #tpu.dimension_semantics<arbitrary>], iteration_bounds = array<i64: 2, 1>, scalar_prefetch = 0 : i64, scratch_operands = 0 : i64, tpu.core_type = #tpu.core_type<tc>, window_params = [{transform_indices = @transform_0, window_bounds = array<i64: 1, 4, 16>}, {pipeline_mode = #tpu.pipeline_mode<synchronous>, transform_indices = @transform_1, window_bounds = array<i64: 8, 4>}, {pipeline_mode = #tpu.pipeline_mode<synchronous>, transform_indices = @transform_2, window_bounds = array<i64: 8, 1>}, {pipeline_mode = #tpu.pipeline_mode<synchronous>, transform_indices = @transform_3, window_bounds = array<i64: 8, 1>}]} {
    %c0_i32 = arith.constant 0 : i32
    %0 = arith.cmpi eq, %arg0, %c0_i32 : i32
    %c0_i32_0 = arith.constant 0 : i32
    %1 = arith.cmpi eq, %arg1, %c0_i32_0 : i32
    %2 = arith.andi %0, %1 : i1
    %3 = arith.extui %2 : i1 to i32
    %c0_i32_1 = arith.constant 0 : i32
    %4 = arith.cmpi ne, %3, %c0_i32_1 : i32
    scf.if %4 {
      %cst_17 = arith.constant 0.000000e+00 : f32
      %22 = vector.broadcast %cst_17 : f32 to vector<8x1xf32>
      %c0_18 = arith.constant 0 : index
      %c0_19 = arith.constant 0 : index
      %23 = vector.load %arg4[%c0_18, %c0_19] : memref<8x1xf32, #tpu.memory_space<vmem>>, vector<8x1xf32>
      tpu.vector_store %arg4[%c0_18, %c0_19], %22 {strides = array<i32>} : memref<8x1xf32, #tpu.memory_space<vmem>>, vector<8x1xf32>,
      %cst_20 = arith.constant 0.000000e+00 : f32
      %24 = vector.broadcast %cst_20 : f32 to vector<8x1xf32>
      %c0_21 = arith.constant 0 : index
      %c0_22 = arith.constant 0 : index
      %25 = vector.load %arg5[%c0_21, %c0_22] : memref<8x1xf32, #tpu.memory_space<vmem>>, vector<8x1xf32>
      tpu.vector_store %arg5[%c0_21, %c0_22], %24 {strides = array<i32>} : memref<8x1xf32, #tpu.memory_space<vmem>>, vector<8x1xf32>,
    } else {
    }
    %c0 = arith.constant 0 : index
    %c0_2 = arith.constant 0 : index
    %5 = vector.load %arg3[%c0, %c0_2] : memref<8x4xf32, #tpu.memory_space<vmem>>, vector<8x4xf32>
    %c0_3 = arith.constant 0 : index
    %c0_4 = arith.constant 0 : index
    %c0_5 = arith.constant 0 : index
    %6 = vector.load %arg2[%c0_3, %c0_4, %c0_5] : memref<1x4x16xf32, #tpu.memory_space<vmem>>, vector<1x4x16xf32>
    %7 = vector.shape_cast %6 : vector<1x4x16xf32> to vector<4x16xf32>
    %cst = arith.constant dense<0.000000e+00> : vector<8x16xf32>
    %8 = tpu.matmul %5, %7, %cst {dimension_numbers = #tpu.dot_dimension_numbers<[1], [0], [0], [1], [0, 0, 1, 1], [], []>} : vector<8x4xf32>, vector<4x16xf32>, vector<8x16xf32> -> vector<8x16xf32>
    %cst_6 = arith.constant 0.000000e+00 : f32
    %9 = vector.broadcast %cst_6 : f32 to vector<8x16xf32>
    %10 = arith.maximumf %8, %9 : vector<8x16xf32>
    %c0_7 = arith.constant 0 : index
    %c0_8 = arith.constant 0 : index
    %11 = vector.load %arg4[%c0_7, %c0_8] : memref<8x1xf32, #tpu.memory_space<vmem>>, vector<8x1xf32>
    %cst_9 = arith.constant dense<0.000000e+00> : vector<8xf32>
    %12 = vector.multi_reduction <add>, %10, %cst_9 [1] : vector<8x16xf32> to vector<8xf32>
    %13 = vector.shape_cast %12 : vector<8xf32> to vector<8x1xf32>
    %14 = arith.addf %11, %13 : vector<8x1xf32>
    %c0_10 = arith.constant 0 : index
    %c0_11 = arith.constant 0 : index
    %15 = vector.load %arg4[%c0_10, %c0_11] : memref<8x1xf32, #tpu.memory_space<vmem>>, vector<8x1xf32>
    tpu.vector_store %arg4[%c0_10, %c0_11], %14 {strides = array<i32>} : memref<8x1xf32, #tpu.memory_space<vmem>>, vector<8x1xf32>,
    %c0_12 = arith.constant 0 : index
    %c0_13 = arith.constant 0 : index
    %16 = vector.load %arg5[%c0_12, %c0_13] : memref<8x1xf32, #tpu.memory_space<vmem>>, vector<8x1xf32>
    %17 = arith.mulf %10, %10 : vector<8x16xf32>
    %cst_14 = arith.constant dense<0.000000e+00> : vector<8xf32>
    %18 = vector.multi_reduction <add>, %17, %cst_14 [1] : vector<8x16xf32> to vector<8xf32>
    %19 = vector.shape_cast %18 : vector<8xf32> to vector<8x1xf32>
    %20 = arith.addf %16, %19 : vector<8x1xf32>
    %c0_15 = arith.constant 0 : index
    %c0_16 = arith.constant 0 : index
    %21 = vector.load %arg5[%c0_15, %c0_16] : memref<8x1xf32, #tpu.memory_space<vmem>>, vector<8x1xf32>
    tpu.vector_store %arg5[%c0_15, %c0_16], %20 {strides = array<i32>} : memref<8x1xf32, #tpu.memory_space<vmem>>, vector<8x1xf32>,
    return
  }
  func.func @transform_0(%arg0: i32, %arg1: i32) -> (i32, i32, i32) {
    %c0_i32 = arith.constant 0 : i32
    %c0_i32_0 = arith.constant 0 : i32
    return %arg0, %c0_i32, %arg1 : i32, i32, i32
  }
  func.func @transform_1(%arg0: i32, %arg1: i32) -> (i32, i32) {
    %c0_i32 = arith.constant 0 : i32
    %c0_i32_0 = arith.constant 0 : i32
    %c0_i32_1 = arith.constant 0 : i32
    return %c0_i32, %c0_i32_0 : i32, i32
  }
  func.func @transform_2(%arg0: i32, %arg1: i32) -> (i32, i32) {
    %c0_i32 = arith.constant 0 : i32
    %c0_i32_0 = arith.constant 0 : i32
    %c0_i32_1 = arith.constant 0 : i32
    return %c0_i32, %c0_i32_0 : i32, i32
  }
  func.func @transform_3(%arg0: i32, %arg1: i32) -> (i32, i32) {
    %c0_i32 = arith.constant 0 : i32
    %c0_i32_0 = arith.constant 0 : i32
    %c0_i32_1 = arith.constant 0 : i32
    return %c0_i32, %c0_i32_0 : i32, i32
  }
}

</mosaic_0001>

<bundles_post_ra>
// kernel: tpu_custom_call.1
= control target key start
LH: loop header
LB: loop body
LE: loop exit
PB: predicated region body
PF: predicated region fallthrough
CT: control target
= control target key end

     0   :  { %s416_s12 = smov 0   ;;  %s418_s13 = smov 0   ;;  %s467_s0 = inlined_call_operand.vmem [shape: f32[2,4,16], index: 0, kind: input, shape index: {}]   ;;  %s468_s1 = inlined_call_operand.vmem [shape: f32[8,4], index: 1, kind: input, shape index: {}]   ;;  %s469_s2 = inlined_call_operand.vmem [shape: f32[8,1], index: 2, kind: output, shape index: {0}]   ;;  %s470_s3 = inlined_call_operand.vmem [shape: f32[8,1], index: 3, kind: output, shape index: {1}]  }
   0x1   :  { %s420_s14 = smov 0  }
   0x2 LB: > { %s26_s15 = sadd.s32 1, %s387_s13  ;;  %p327_p0 = scmp.ge.s32.totalorder %s391_s14, 1  ;;  %s391_s14 = sphi %s420_s14, %s14_s14   ;;  %s387_s13 = sphi %s418_s13, %s472_s13   ;;  %s383_s12 = sphi %s416_s12, %s471_s12  }
   0x3   : > { %p28_p1 = scmp.ge.s32.totalorder %s26_s15, 2  ;;  %p146_p2 = scmp.lt.s32.totalorder %s391_s14, 3 }
   0x5   : > { %s474_s15 = smov (%p28_p1, %s26_s15), 0  ;;  %p147_p3 = pnand %p327_p0, %p146_p2 }
   0x6   : > { %p167_p4 = scmp.lt.s32.totalorder (!%p147_p3), %s383_s12, 1  ;;  %p174_p5 = scmp.eq.s32.totalorder (!%p147_p3), %s383_s12, 0 }
   0x7   : > { %150 = sbr.rel (%p147_p3) target bundleno = 388 (0x184), region = 28 }
   0xe   : > { %s476_s12 = smov (!%p167_p4, %s383_s12), 1  ;;  %179 = sbr.rel (!%p174_p5) target bundleno = 21 (0x15), region = 32 }
   0xf   : > { %s328_s16 = sshll.u32 %s476_s12, 2  ;;  %vm180_vm0 = vcmask (%p174_p5), 7168   ;;  %v393_v0 = vmov (%p174_p5), 0.0  }
  0x10   : > { %s173_s19 = scalar_lea.vmem %s467_s0, %s328_s16  ;;  %181 = vst.msk [vmem:[%s469_s2] sm:$0xff] (%p174_p5), %vm180_vm0, %v393_v0  ;;  %182 = vst.msk [vmem:[%s470_s3] sm:$0xff] (%p174_p5), %vm180_vm0, %v393_v0 }
  0x15 PF: > { %v184_v1 = vld [vmem:[%s173_s19] sm:$0xf]  ;;  %vm189_vm1 = vcmask 1043456   ;;  %v394_v3 = vmov 0.0   ;;  %vm395_vm2 = vmmov 0   ;;  %vm185_vm3 = vcmask 31744  }
  0x16   : > { %v183_v2 = vld [vmem:[%s468_s1] sm:$0xff]  ;;  %337 = vmatprep.subr.mxu0 %v394_v3  ;;  %339 = vmatprep.mubr.msk.f32.mxu0 %vm395_vm2, %v394_v3  ;;  %vm265_vm4 = vcmask 130048   ;;  %vm270_vm5 = vcmask 7168  }
  0x17   : > { %338 = vmatpush3.msk.msra.mxu0 %vm189_vm1, %v184_v1  ;;  %v264_v10 = vld [vmem:[%s469_s2] sm:$0xff] }
  0x18   : > { %340 = vmatmul.mubr.msk.f32.vlgmr.msra.gmra.mrb[0].mxu0 %vm185_vm3, %v183_v2  ;;  %v272_v13 = vld [vmem:[%s470_s3] sm:$0xff] }
  0xeb   : > { %v259_v4 = vpop.f32.mrb[0].mxu0 }
  0xec   : > { %v263_v5 = vmax.f32 %v259_v4, 0.0  ;;  %v341_v6 = vpop.f32.mrb[1].mxu0 }
  0xee   : > { %v266_v7 = vsel %vm265_vm4, %v263_v5, 0.0  ;;  %v273_v8 = vmul.f32 %v263_v5, %v263_v5 }
  0xef   : > { %267 = vadd.xlane.f32.xlu0 %v266_v7 }
  0xf0   : > { %v274_v9 = vsel %vm265_vm4, %v273_v8, 0.0 }
  0xf3   : > { %275 = vadd.xlane.f32.xlu0 %v274_v9 }
 0x17c   : > { %v268_v11 = vpop.xlane.xlu0 %267 }
 0x17d   : > { %v269_v12 = vadd.f32 %v268_v11, %v264_v10 }
 0x17f   : > { %271 = vst.msk [vmem:[%s469_s2] sm:$0xff] %vm270_vm5, %v269_v12 }
 0x180   : > { %v276_v14 = vpop.xlane.xlu0 %275 }
 0x181   : > { %v277_v15 = vadd.f32 %v276_v14, %v272_v13 }
 0x183   : > { %278 = vst.msk [vmem:[%s470_s3] sm:$0xff] %vm270_vm5, %v277_v15 }
 0x184 PF: > { %s14_s14 = sadd.s32 1, %s391_s14   ;;  %s471_s12 = smov %s387_s13 }
 0x185   : > { %p11_p6 = scmp.ge.s32.totalorder %s14_s14, 4   ;;  %s472_s13 = smov %s474_s15 }
 0x187   :  { %13 = sbr.rel (!%p11_p6) target bundleno = 2 (0x2), region = 66 }

</bundles_post_ra>
